<compile_context>
chip_gen: v5e
topology: v5e:2x2
jax: 0.10.0
libtpu: 0.0.40
codegen_flags: <defaults>
</compile_context>

<pallas_src>
import jax
import jax.numpy as jnp
from jax.experimental import pallas as pl
from jax.experimental.pallas import tpu as pltpu


def basis_kernel(p_ref, w_ref, b_ref, o_ref):
    # p_ref: (TILE_N, D) VMEM; w_ref: (1, D) VMEM (resident); b_ref: (1,) SMEM;
    # o_ref: (1, TILE_N) VMEM (lane-dense output row).
    prod = p_ref[...].astype(jnp.float32) * w_ref[...].astype(jnp.float32)  # (TILE_N, D)
    val = jnp.sum(prod, axis=1)                                             # (TILE_N,)
    val = val + b_ref[0]
    # TODO(synk): activation_function is a runtime ctor arg in PyTorch; fixed to tanh here.
    act = jnp.tanh(val)
    o_ref[...] = act[None, :].astype(o_ref.dtype)                           # (1, TILE_N)


def _choose_tile_n(n, d, itemsize):
    """Pick the batch-tile size.

    Mem-bound kernel: make tiles as big as is safe for the smallest scoped-VMEM
    budget (v7x: 64 MiB physical / 32 MiB default scoped). ~4 MiB per p tile
    (8 MiB double-buffered), capped at 16384 rows, multiple of 128 so the
    output block is lane-dense; keep >=2 grid steps for megacore (v7x 2 TCs).
    """
    if n <= 256:
        return n  # single tile; block shape equals full array dims (always legal)
    budget_rows = (4 * 1024 * 1024) // max(1, d * itemsize)
    tile = min(16384, budget_rows, (n // 2 // 128) * 128)
    tile = max(128, (tile // 128) * 128)
    return tile


def basis_function_forward(p, weight, bias):
    """p: (N, D); weight: (1, D) (PyTorch nn.Linear layout); bias: (1,). Returns (N, 1)."""
    n, d = p.shape
    assert weight.shape == (1, d)
    assert bias.shape == (1,)

    tile_n = _choose_tile_n(n, d, p.dtype.itemsize)
    grid = (pl.cdiv(n, tile_n),)

    out_row = pl.pallas_call(
        basis_kernel,
        out_shape=jax.ShapeDtypeStruct((1, n), p.dtype),
        grid_spec=pltpu.PrefetchScalarGridSpec(
            num_scalar_prefetch=0,
            grid=grid,
            in_specs=[
                pl.BlockSpec((tile_n, d), lambda i: (i, 0)),            # p batch tile
                pl.BlockSpec((1, d), lambda i: (0, 0)),                 # weight row (resident)
                pl.BlockSpec(memory_space=pltpu.MemorySpace.SMEM),      # bias scalar in SMEM
            ],
            out_specs=pl.BlockSpec((1, tile_n), lambda i: (0, i)),      # lane-dense output row
        ),
        compiler_params=pltpu.CompilerParams(
            dimension_semantics=("parallel",),
        ),
    )(p, weight, bias)
    # (1, N) -> (N, 1): same contiguous data, free reshape in the wrapper.
    return out_row.reshape(n, 1)


def _reference(p, weight, bias):
    return jnp.tanh(p @ weight.T + bias)


if __name__ == "__main__":
    key = jax.random.PRNGKey(0)

    # Small shapes consistent with the module: batch=16, base_dim=32.
    N, BASE_DIM = 16, 32
    kp, kw, kb = jax.random.split(key, 3)
    p = jax.random.normal(kp, (N, BASE_DIM), dtype=jnp.float32)
    bound = 1.0 / jnp.sqrt(BASE_DIM)
    weight = jax.random.uniform(kw, (1, BASE_DIM), jnp.float32, -bound, bound)
    bias = jax.random.uniform(kb, (1,), jnp.float32, -bound, bound)

    out = jax.block_until_ready(basis_function_forward(p, weight, bias))
    ref = _reference(p, weight, bias)
    assert out.shape == (N, 1)
    assert jnp.allclose(out, ref, atol=1e-5, rtol=1e-5), "mismatch vs reference (small)"

    # Second check: multi-tile grid with a ragged last tile (N not divisible by tile_n).
    N2 = 777
    kp2, kw2, kb2 = jax.random.split(jax.random.PRNGKey(1), 3)
    p2 = jax.random.normal(kp2, (N2, BASE_DIM), dtype=jnp.float32)
    weight2 = jax.random.uniform(kw2, (1, BASE_DIM), jnp.float32, -bound, bound)
    bias2 = jax.random.uniform(kb2, (1,), jnp.float32, -bound, bound)

    out2 = jax.block_until_ready(basis_function_forward(p2, weight2, bias2))
    ref2 = _reference(p2, weight2, bias2)
    assert out2.shape == (N2, 1)
    assert jnp.allclose(out2, ref2, atol=1e-5, rtol=1e-5), "mismatch vs reference (ragged)"

    print("KERNEL_OK")
</pallas_src>

<mosaic_0001>
module attributes {stable_mosaic.version = 11 : i64} {
  func.func @basis_kernel(%arg0: i32, %arg1: memref<16x32xf32, #tpu.memory_space<vmem>>, %arg2: memref<1x32xf32, #tpu.memory_space<vmem>>, %arg3: memref<1xf32, #tpu.memory_space<smem>>, %arg4: memref<1x16xf32, #tpu.memory_space<vmem>>) attributes {dimension_semantics = [#tpu.dimension_semantics<parallel>], iteration_bounds = array<i64: 1>, scalar_prefetch = 0 : i64, scratch_operands = 0 : i64, tpu.core_type = #tpu.core_type<tc>, window_params = [{transform_indices = @transform_0, window_bounds = array<i64: 16, 32>}, {pipeline_mode = #tpu.pipeline_mode<synchronous>, transform_indices = @transform_1, window_bounds = array<i64: 1, 32>}, {transform_indices = @transform_2, window_bounds = array<i64: 1>}, {transform_indices = @transform_3, window_bounds = array<i64: 1, 16>}]} {
    %c0 = arith.constant 0 : index
    %c0_0 = arith.constant 0 : index
    %0 = vector.load %arg1[%c0, %c0_0] : memref<16x32xf32, #tpu.memory_space<vmem>>, vector<16x32xf32>
    %c0_1 = arith.constant 0 : index
    %c0_2 = arith.constant 0 : index
    %1 = vector.load %arg2[%c0_1, %c0_2] : memref<1x32xf32, #tpu.memory_space<vmem>>, vector<1x32xf32>
    %2 = vector.broadcast %1 : vector<1x32xf32> to vector<16x32xf32>
    %3 = arith.mulf %0, %2 : vector<16x32xf32>
    %cst = arith.constant dense<0.000000e+00> : vector<16xf32>
    %4 = vector.multi_reduction <add>, %3, %cst [1] : vector<16x32xf32> to vector<16xf32>
    %c0_3 = arith.constant 0 : index
    %5 = memref.load %arg3[%c0_3] : memref<1xf32, #tpu.memory_space<smem>>
    %6 = vector.broadcast %5 : f32 to vector<16xf32>
    %7 = arith.addf %4, %6 : vector<16xf32>
    %8 = math.tanh %7 : vector<16xf32>
    %9 = vector.shape_cast %8 : vector<16xf32> to vector<1x16xf32>
    %c0_4 = arith.constant 0 : index
    %c0_5 = arith.constant 0 : index
    %10 = vector.load %arg4[%c0_4, %c0_5] : memref<1x16xf32, #tpu.memory_space<vmem>>, vector<1x16xf32>
    tpu.vector_store %arg4[%c0_4, %c0_5], %9 {strides = array<i32>} : memref<1x16xf32, #tpu.memory_space<vmem>>, vector<1x16xf32>,
    return
  }
  func.func @transform_0(%arg0: i32) -> (i32, i32) {
    %c0_i32 = arith.constant 0 : i32
    %c0_i32_0 = arith.constant 0 : i32
    return %arg0, %c0_i32 : i32, i32
  }
  func.func @transform_1(%arg0: i32) -> (i32, i32) {
    %c0_i32 = arith.constant 0 : i32
    %c0_i32_0 = arith.constant 0 : i32
    %c0_i32_1 = arith.constant 0 : i32
    return %c0_i32, %c0_i32_0 : i32, i32
  }
  func.func @transform_2(%arg0: i32) -> i32 {
    %c0_i32 = arith.constant 0 : i32
    %c0_i32_0 = arith.constant 0 : i32
    return %c0_i32 : i32
  }
  func.func @transform_3(%arg0: i32) -> (i32, i32) {
    %c0_i32 = arith.constant 0 : i32
    %c0_i32_0 = arith.constant 0 : i32
    return %c0_i32, %arg0 : i32, i32
  }
}

</mosaic_0001>

<bundles_post_ra>
// kernel: tpu_custom_call.1
= control target key start
LH: loop header
LB: loop body
LE: loop exit
PB: predicated region body
PF: predicated region fallthrough
CT: control target
= control target key end

     0   :  { %9 = vsyncpa [#allocation4], 0  ;;  %s179_s0 = inlined_call_operand.hbm [shape: f32[16,32], index: 0, kind: input, shape index: {}]   ;;  %s180_s1 = inlined_call_operand.vmem [shape: f32[1,32], index: 1, kind: input, shape index: {}]   ;;  %s181_s2 = inlined_call_operand.<no memory space> [shape: f32[1], index: 2, kind: input, shape index: {}]   ;;  %s182_s3 = inlined_call_operand.hbm [shape: f32[1,16], index: 3, kind: output, shape index: {}]  }
   0x1   :  { %10 = vsyncpa [#allocation5], 0  ;;  %s15_s14 = sshll.u32 %s179_s0, 4  ;;  %s143_s15 = smov [#allocation3]   ;;  %s16_s14 = int_to_ptr.hbm [resolvable:$true] %s15_s14 }
   0x2   :  { %s17_s16 = sshll.u32 %s143_s15, 4  ;;  %s144_s17 = smov 128   ;;  %s18_s16 = int_to_ptr.vmem [resolvable:$true] %s17_s16 }
   0x3   :  { %s145_s18 = smov 8  }
   0x4   :  { %23 = dma.hbm_to_vmem [thread:$0]  %s16_s14, 256, %s18_s16, [#allocation4], %s144_s17, %s144_s17, %s145_s18  }
   0x5   :  { %139 = dma.done.wait [#allocation4], 256  }
   0x6   :  { %140 = vsyncadd [#allocation4], 4294967040  ;;  %v32_v0 = vld [vmem:[#allocation3] sm:$0xff]  ;;  %vm40_vm0 = vcmask 261120   ;;  %v33_v3 = vld [vmem:[#allocation3 + $0x8] sm:$0xff]  ;;  %v48_v8 = vstv %s181_s2  ;;  %v55_v10 = vlaneseq  ;;  %s72_s25 = sshll.u32 %s182_s3, 4  ;;  %s73_s25 = int_to_ptr.hbm [resolvable:$true] %s72_s25 }
   0x7   :  { %v86_v1 = vld [vmem:[%s180_s1] ss:$0 sm:$0xff]  ;;  %s146_s1 = smov [#allocation6]   ;;  %vm60_vm1 = vcmask 130112   ;;  %vm63_vm2 = vcmask 122880  }
   0x8   :  { %v38_v2 = vmul.f32 %v86_v1, %v32_v0  ;;  %v39_v5 = vmul.f32 %v86_v1, %v33_v3  ;;  %v56_v13 = vand.u32 127, %v55_v10  ;;  %s70_s22 = sshll.u32 %s146_s1, 4  ;;  %s71_s22 = int_to_ptr.vmem [resolvable:$true] %s70_s22 }
   0xa   :  { %v41_v4 = vsel %vm40_vm0, %v38_v2, 0.0  ;;  %v44_v6 = vsel %vm40_vm0, %v39_v5, 0.0  ;;  %v58_v14 = vadd.s32 4294967288, %v56_v13 }
   0xb   :  { %42 = vadd.xlane.f32.xlu0 %v41_v4 }
  0x13   :  { %45 = vadd.xlane.f32.xlu0 %v44_v6 }
  0x7e   :  { %v43_v7 = vpop.xlane.xlu0 %42 }
  0x7f   :  { %v49_v9 = vadd.f32 %v48_v8, %v43_v7 }
  0x81   :  { %87 = vtanh.f32 %v49_v9 }
  0x86   :  { %v46_v11 = vpop.xlane.xlu0 %45 }
  0x87   :  { %v50_v12 = vadd.f32 %v48_v8, %v46_v11  ;;  %v88_v15 = vpop.eup %87 }
  0x88   :  { %v57_v17 = vperm.slane %v88_v15, %v56_v13 }
  0x89   :  { %89 = vtanh.f32 %v50_v12 }
  0x8f   :  { %v90_v16 = vpop.eup %89 }
  0x90   :  { %v59_v18 = vperm.slane %v90_v16, %v58_v14 }
  0x92   :  { %v61_v19 = vsel %vm60_vm1, %v59_v18, %v57_v17 }
  0x93   :  { %64 = vst.msk [vmem:[#allocation6] sm:$0x1] %vm63_vm2, %v61_v19 }
  0x94   :  { %75 = dma.vmem_to_hbm [thread:$0]  %s71_s22, 16, %s73_s25, [#allocation5]  }
  0x95   :  { %141 = dma.done.wait [#allocation5], 16  }
  0x96   :  { %142 = vsyncadd [#allocation5], 4294967280 }
  0x97   :  { %80 = vsyncpa [#allocation4], 1 }
  0x98   :  { %81 = vsyncpa [#allocation5], 1 }

</bundles_post_ra>
